<compile_context>
chip_gen: v7x
topology: tpu7x:2x2x1
jax: 0.10.0
libtpu: 0.0.40
codegen_flags: <defaults>
</compile_context>

<pallas_src>
import jax
import jax.numpy as jnp
from jax.experimental import pallas as pl
from jax.experimental.pallas import tpu as pltpu

# TODO(synk): the frozen pretrained ESM encoder (AutoModel.from_pretrained) has
# no Pallas equivalent without its checkpoint; its pooler_output is the input.

FC_HIDDEN_SIZE = 640                     # fc_hidden_size in the module
HIDDEN_SIZE = FC_HIDDEN_SIZE // 10       # = 64
LANE = 128                               # hidden width padded to full vreg lanes
DEFAULT_BLOCK_B = 2048                   # batch tile (multiple of 8)


def _round_up(n, m):
    return ((n + m - 1) // m) * m


def _head_kernel(x_ref, w1_ref, b1_ref, w2_ref, b2_ref, o_ref):
    """One batch tile of the regression head.

    x_ref : [TB, 640]  bf16  pooler_output tile (streamed)
    w1_ref: [640, 128] bf16  fc weight, transposed + zero-padded 64 -> 128 (resident)
    b1_ref: [1, 128]   f32   fc bias, zero-padded (resident)
    w2_ref: [1, 128]   f32   fc_out weight row, zero-padded (resident)
    b2_ref: [1, 1]     f32   fc_out bias (SMEM scalar)
    o_ref : [TB, 1]    f32
    """
    # fc: MXU matmul, f32 accumulation; bias + ReLU on full 128-lane vregs.
    h = jnp.dot(x_ref[...], w1_ref[...], preferred_element_type=jnp.float32)
    h = jnp.maximum(h + b1_ref[...], 0.0)
    # fc_out (64 -> 1): avoid an N=1 MXU matmul; VPU multiply + lane reduce
    # (padded lanes of h and w2 are zero, so they contribute nothing).
    out = jnp.sum(h * w2_ref[...], axis=-1, keepdims=True) + b2_ref[0, 0]
    o_ref[...] = out.astype(o_ref.dtype)


def develop_esm_head(pooler_output, params, *, block_b=DEFAULT_BLOCK_B):
    """Pallas head: relu(x @ W1 + b1) . w2 + b2  ->  preds [B, 1] (f32)."""
    B, F = pooler_output.shape
    assert F == FC_HIDDEN_SIZE, f"expected pooler_output [B, {FC_HIDDEN_SIZE}]"

    # Batch tile: multiple of 8 sublanes; never larger than the (padded) batch.
    tb = min(block_b, _round_up(B, 8))
    b_pad = _round_up(B, tb)
    num_tiles = b_pad // tb

    # HBM traffic for x is bf16 (in a real pipeline the encoder output would
    # already be bf16; this cast is a no-op in that case).
    x = pooler_output.astype(jnp.bfloat16)
    if b_pad != B:
        x = jnp.pad(x, ((0, b_pad - B), (0, 0)))

    out = pl.pallas_call(
        _head_kernel,
        out_shape=jax.ShapeDtypeStruct((b_pad, 1), jnp.float32),
        grid=(num_tiles,),
        in_specs=[
            pl.BlockSpec((tb, F), lambda i: (i, 0)),             # x: streamed
            pl.BlockSpec((F, LANE), lambda i: (0, 0)),           # w1: resident
            pl.BlockSpec((1, LANE), lambda i: (0, 0)),           # b1: resident
            pl.BlockSpec((1, LANE), lambda i: (0, 0)),           # w2: resident
            pl.BlockSpec(memory_space=pltpu.MemorySpace.SMEM),   # b2: scalar
        ],
        out_specs=pl.BlockSpec((tb, 1), lambda i: (i, 0)),
        compiler_params=pltpu.CompilerParams(
            dimension_semantics=("parallel",),                   # megacore on v7x
        ),
    )(x, params["w1"], params["b1"], params["w2"], params["b2"])

    return out[:B]


def develop_esm_forward(pooler_output, params, labels=None,
                        *, block_b=DEFAULT_BLOCK_B):
    """Mirrors develop_esm.forward (use_pooling=False, eval-mode dropout)."""
    preds = develop_esm_head(pooler_output, params, block_b=block_b)
    loss = None
    if labels is not None:
        # nn.MSELoss on squeezed preds/labels (plain-JAX glue, not the hot path).
        loss = jnp.mean((jnp.squeeze(preds) - jnp.squeeze(labels)) ** 2)
    return loss, preds


def init_params(key):
    """Logical parameters mirroring the module's __init__."""
    k1, k2, k3 = jax.random.split(key, 3)
    # fc: xavier_uniform weight, zero bias (use_keras_init=True path).
    limit1 = (6.0 / (FC_HIDDEN_SIZE + HIDDEN_SIZE)) ** 0.5
    w1 = jax.random.uniform(k1, (FC_HIDDEN_SIZE, HIDDEN_SIZE),
                            minval=-limit1, maxval=limit1, dtype=jnp.float32)
    b1 = jnp.zeros((HIDDEN_SIZE,), dtype=jnp.float32)
    # fc_out: default PyTorch Linear init (kaiming-uniform style bounds).
    limit2 = (1.0 / HIDDEN_SIZE) ** 0.5
    w2 = jax.random.uniform(k2, (HIDDEN_SIZE,),
                            minval=-limit2, maxval=limit2, dtype=jnp.float32)
    b2 = jax.random.uniform(k3, (),
                            minval=-limit2, maxval=limit2, dtype=jnp.float32)
    return {"w1": w1, "b1": b1, "w2": w2, "b2": b2}


def pack_params(params):
    """Pad / cast logical params into the kernel's lane-dense layouts."""
    w1 = jnp.zeros((FC_HIDDEN_SIZE, LANE), jnp.float32)
    w1 = w1.at[:, :HIDDEN_SIZE].set(params["w1"])
    b1 = jnp.zeros((1, LANE), jnp.float32).at[0, :HIDDEN_SIZE].set(params["b1"])
    w2 = jnp.zeros((1, LANE), jnp.float32).at[0, :HIDDEN_SIZE].set(params["w2"])
    b2 = jnp.reshape(params["b2"], (1, 1)).astype(jnp.float32)
    return {"w1": w1.astype(jnp.bfloat16), "b1": b1, "w2": w2, "b2": b2}


if __name__ == "__main__":
    key = jax.random.PRNGKey(0)
    kx, kl, kp = jax.random.split(key, 3)

    B = 8
    # Stand-in for the frozen ESM encoder's pooler_output: [B, 640].
    pooler_output = jax.random.normal(kx, (B, FC_HIDDEN_SIZE), dtype=jnp.float32)
    labels = jax.random.normal(kl, (B,), dtype=jnp.float32)

    params = init_params(kp)
    kernel_params = pack_params(params)

    loss, preds = develop_esm_forward(pooler_output, kernel_params, labels=labels)
    preds = jax.block_until_ready(preds)
    loss = jax.block_until_ready(loss)

    # Pure-JAX f32 reference of the head (kernel uses bf16 x/w1 -> looser tol).
    h_ref = jnp.maximum(pooler_output @ params["w1"] + params["b1"], 0.0)
    ref = h_ref @ params["w2"][:, None] + params["b2"]
    assert preds.shape == (B, 1)
    assert jnp.isfinite(loss)
    assert jnp.allclose(preds, ref, atol=5e-2, rtol=5e-2), (preds, ref)

    print("KERNEL_OK")
</pallas_src>

<mosaic_0001>
module attributes {stable_mosaic.version = 11 : i64} {
  func.func @_head_kernel(%arg0: i32, %arg1: memref<8x640xbf16, #tpu.memory_space<vmem>>, %arg2: memref<640x128xbf16, #tpu.memory_space<vmem>>, %arg3: memref<1x128xf32, #tpu.memory_space<vmem>>, %arg4: memref<1x128xf32, #tpu.memory_space<vmem>>, %arg5: memref<1x1xf32, #tpu.memory_space<smem>>, %arg6: memref<8x1xf32, #tpu.memory_space<vmem>>) attributes {dimension_semantics = [#tpu.dimension_semantics<parallel>], iteration_bounds = array<i64: 1>, scalar_prefetch = 0 : i64, scratch_operands = 0 : i64, tpu.core_type = #tpu.core_type<tc>, window_params = [{transform_indices = @transform_0, window_bounds = array<i64: 8, 640>}, {pipeline_mode = #tpu.pipeline_mode<synchronous>, transform_indices = @transform_1, window_bounds = array<i64: 640, 128>}, {pipeline_mode = #tpu.pipeline_mode<synchronous>, transform_indices = @transform_2, window_bounds = array<i64: 1, 128>}, {pipeline_mode = #tpu.pipeline_mode<synchronous>, transform_indices = @transform_3, window_bounds = array<i64: 1, 128>}, {transform_indices = @transform_4, window_bounds = array<i64: 1, 1>}, {transform_indices = @transform_5, window_bounds = array<i64: 8, 1>}]} {
    %c0 = arith.constant 0 : index
    %c0_0 = arith.constant 0 : index
    %0 = vector.load %arg1[%c0, %c0_0] : memref<8x640xbf16, #tpu.memory_space<vmem>>, vector<8x640xbf16>
    %c0_1 = arith.constant 0 : index
    %c0_2 = arith.constant 0 : index
    %1 = vector.load %arg2[%c0_1, %c0_2] : memref<640x128xbf16, #tpu.memory_space<vmem>>, vector<640x128xbf16>
    %cst = arith.constant dense<0.000000e+00> : vector<8x128xf32>
    %2 = tpu.matmul %0, %1, %cst {dimension_numbers = #tpu.dot_dimension_numbers<[1], [0], [0], [1], [0, 0, 1, 1], [], []>} : vector<8x640xbf16>, vector<640x128xbf16>, vector<8x128xf32> -> vector<8x128xf32>
    %c0_3 = arith.constant 0 : index
    %c0_4 = arith.constant 0 : index
    %3 = vector.load %arg3[%c0_3, %c0_4] : memref<1x128xf32, #tpu.memory_space<vmem>>, vector<1x128xf32>
    %4 = vector.broadcast %3 : vector<1x128xf32> to vector<8x128xf32>
    %5 = arith.addf %2, %4 : vector<8x128xf32>
    %cst_5 = arith.constant 0.000000e+00 : f32
    %6 = vector.broadcast %cst_5 : f32 to vector<8x128xf32>
    %7 = arith.maximumf %5, %6 : vector<8x128xf32>
    %c0_6 = arith.constant 0 : index
    %c0_7 = arith.constant 0 : index
    %8 = vector.load %arg4[%c0_6, %c0_7] : memref<1x128xf32, #tpu.memory_space<vmem>>, vector<1x128xf32>
    %9 = vector.broadcast %8 : vector<1x128xf32> to vector<8x128xf32>
    %10 = arith.mulf %7, %9 : vector<8x128xf32>
    %cst_8 = arith.constant dense<0.000000e+00> : vector<8xf32>
    %11 = vector.multi_reduction <add>, %10, %cst_8 [1] : vector<8x128xf32> to vector<8xf32>
    %12 = vector.shape_cast %11 : vector<8xf32> to vector<8x1xf32>
    %c0_9 = arith.constant 0 : index
    %c0_10 = arith.constant 0 : index
    %13 = memref.load %arg5[%c0_9, %c0_10] : memref<1x1xf32, #tpu.memory_space<smem>>
    %14 = vector.broadcast %13 : f32 to vector<8x1xf32>
    %15 = arith.addf %12, %14 : vector<8x1xf32>
    %c0_11 = arith.constant 0 : index
    %c0_12 = arith.constant 0 : index
    %16 = vector.load %arg6[%c0_11, %c0_12] : memref<8x1xf32, #tpu.memory_space<vmem>>, vector<8x1xf32>
    tpu.vector_store %arg6[%c0_11, %c0_12], %15 {strides = array<i32>} : memref<8x1xf32, #tpu.memory_space<vmem>>, vector<8x1xf32>,
    return
  }
  func.func @transform_0(%arg0: i32) -> (i32, i32) {
    %c0_i32 = arith.constant 0 : i32
    %c0_i32_0 = arith.constant 0 : i32
    return %arg0, %c0_i32 : i32, i32
  }
  func.func @transform_1(%arg0: i32) -> (i32, i32) {
    %c0_i32 = arith.constant 0 : i32
    %c0_i32_0 = arith.constant 0 : i32
    %c0_i32_1 = arith.constant 0 : i32
    return %c0_i32, %c0_i32_0 : i32, i32
  }
  func.func @transform_2(%arg0: i32) -> (i32, i32) {
    %c0_i32 = arith.constant 0 : i32
    %c0_i32_0 = arith.constant 0 : i32
    %c0_i32_1 = arith.constant 0 : i32
    return %c0_i32, %c0_i32_0 : i32, i32
  }
  func.func @transform_3(%arg0: i32) -> (i32, i32) {
    %c0_i32 = arith.constant 0 : i32
    %c0_i32_0 = arith.constant 0 : i32
    %c0_i32_1 = arith.constant 0 : i32
    return %c0_i32, %c0_i32_0 : i32, i32
  }
  func.func @transform_4(%arg0: i32) -> (i32, i32) {
    %c0_i32 = arith.constant 0 : i32
    %c0_i32_0 = arith.constant 0 : i32
    %c0_i32_1 = arith.constant 0 : i32
    return %c0_i32, %c0_i32_0 : i32, i32
  }
  func.func @transform_5(%arg0: i32) -> (i32, i32) {
    %c0_i32 = arith.constant 0 : i32
    %c0_i32_0 = arith.constant 0 : i32
    return %arg0, %c0_i32 : i32, i32
  }
}

</mosaic_0001>

<bundles_post_ra>
// kernel: tpu_custom_call.1
= control target key start
LH: loop header
LB: loop body
LE: loop exit
PB: predicated region body
PF: predicated region fallthrough
CT: control target
= control target key end

     0   :  { %11 = vsyncpa [#allocation4], 0  ;;  %s836_s0 = inlined_call_operand.hbm [shape: bf16[8,640], index: 0, kind: input, shape index: {}]   ;;  %s837_s1 = inlined_call_operand.hbm [shape: bf16[640,128], index: 1, kind: input, shape index: {}]   ;;  %s838_s2 = inlined_call_operand.vmem [shape: f32[1,128], index: 2, kind: input, shape index: {}]   ;;  %s839_s3 = inlined_call_operand.vmem [shape: f32[1,128], index: 3, kind: input, shape index: {}]   ;;  %s840_s4 = inlined_call_operand.<no memory space> [shape: f32[1,1], index: 4, kind: input, shape index: {}]   ;;  %s841_s5 = inlined_call_operand.vmem [shape: f32[8,1], index: 5, kind: output, shape index: {}]  }
   0x1   :  { %12 = vsyncpa [#allocation6], 0  ;;  %s757_s18 = smov [#allocation3]   ;;  %s758_s20 = smov [#allocation5]  }
   0x2   :  { %s19_s19 = sshll.u32 %s757_s18, 4  ;;  %s28_s21 = sshll.u32 %s758_s20, 4  ;;  %s20_s19 = int_to_ptr.vmem [resolvable:$true] %s19_s19  ;;  %s793_s21 = int_to_ptr.vmem [resolvable:$true] %s28_s21 }
   0x3   :  { %s709_s24 = scalar_lea.hbm %s836_s0, 320 }
   0x4   :  { %p710_p0 = scmp.ne.s32.totalorder %s836_s0, %s709_s24  ;;  %p713_p1 = scmp.lt.u32.totalorder %s709_s24, %s836_s0 }
   0x6   :  { %p715_p2 = pnand %p713_p1, %p710_p0 }
   0x8   :  { %718 = shalt.err (!%p715_p2)
}
   0x9   :  { %s719_s29 = scalar_lea.vmem %s20_s19, 320  ;;  %p724_p4 = scmp.lt.s32.totalorder %s20_s19, %s20_s19 }
   0xa   :  { %p720_p3 = scmp.ne.s32.totalorder %s20_s19, %s719_s29  ;;  %p725_p5 = scmp.lt.s32.totalorder %s719_s29, %s719_s29 }
   0xc   :  { %p726_p6 = por %p725_p5, %p724_p4 }
   0xe   :  { %p727_p7 = pnand %p726_p6, %p720_p3 }
  0x10   :  { %730 = shalt.err (!%p727_p7)
}
  0x11   :  { %22 = dma.hbm_to_vmem [thread:$0]  %s836_s0, 320, %s20_s19, [#allocation4]  }
  0x12   :  { %s731_s9 = scalar_lea.hbm %s837_s1, 5120 }
  0x13   :  { %p732_p8 = scmp.ne.s32.totalorder %s837_s1, %s731_s9  ;;  %p735_p9 = scmp.lt.u32.totalorder %s731_s9, %s837_s1 }
  0x15   :  { %p737_p10 = pnand %p735_p9, %p732_p8 }
  0x17   :  { %740 = shalt.err (!%p737_p10)
}
  0x18   :  { %s741_s14 = scalar_lea.vmem %s793_s21, 5120  ;;  %p746_p12 = scmp.lt.s32.totalorder %s793_s21, %s793_s21 }
  0x19   :  { %p742_p11 = scmp.ne.s32.totalorder %s793_s21, %s741_s14  ;;  %p747_p13 = scmp.lt.s32.totalorder %s741_s14, %s741_s14 }
  0x1b   :  { %p748_p0 = por %p747_p13, %p746_p12 }
  0x1d   :  { %p749_p1 = pnand %p748_p0, %p742_p11 }
  0x1f   :  { %752 = shalt.err (!%p749_p1)
}
  0x20   :  { %s759_s0 = smov 64   ;;  %s760_s15 = smov 4  }
  0x21   :  { %34 = dma.hbm_to_vmem [thread:$0]  %s837_s1, 5120, %s793_s21, [#allocation6], %s759_s0, %s759_s0, %s760_s15  }
  0x22   :  { %753 = dma.done.wait [#allocation4], 320  }
  0x23   :  { %754 = vsyncadd [#allocation4], 4294966976 }
  0x24   :  { %755 = dma.done.wait [#allocation6], 5120  }
  0x25   :  { %756 = vsyncadd [#allocation6], 4294962176  ;;  %v664_v0 = vld [vmem:[#allocation5 + $0x40] sm:$0xff]   ;;  %v668_v4 = vld [vmem:[#allocation5 + $0x48] sm:$0xff]   ;;  %v761_v35 = vmov 0.0   ;;  %vm762_vm0 = vmmov 0  }
  0x26   :  { %v665_v1 = vld [vmem:[#allocation5] sm:$0xff]   ;;  %585 = vmatprep.subr.bf16.mxu0 %v664_v0  ;;  %v669_v5 = vld [vmem:[#allocation5 + $0x8] sm:$0xff]   ;;  %v672_v8 = vld [vmem:[#allocation5 + $0x50] sm:$0xff]   ;;  %vm530_vm1 = vcmask 7168  }
  0x27   :  { %v666_v2 = vld [vmem:[#allocation5 + $0xc0] sm:$0xff]   ;;  %586 = vmatpush3.bf16.msra.mxu0 %v665_v1  ;;  %v670_v6 = vld [vmem:[#allocation5 + $0xc8] sm:$0xff]   ;;  %v673_v9 = vld [vmem:[#allocation5 + $0x10] sm:$0xff]  }
  0x28   :  { %v667_v3 = vld [vmem:[#allocation5 + $0x80] sm:$0xff]   ;;  %607 = vmatprep.subr.bf16.mxu1 %v666_v2  ;;  %587 = vmatprep.subr.bf16.mxu0 %v668_v4  ;;  %v671_v7 = vld [vmem:[#allocation5 + $0x88] sm:$0xff]   ;;  %v674_v10 = vld [vmem:[#allocation5 + $0xd0] sm:$0xff]  }
  0x29   :  { %608 = vmatpush3.bf16.msra.mxu1 %v667_v3  ;;  %v675_v11 = vld [vmem:[#allocation5 + $0x90] sm:$0xff]   ;;  %v676_v12 = vld [vmem:[#allocation5 + $0x58] sm:$0xff]   ;;  %v680_v16 = vld [vmem:[#allocation5 + $0x60] sm:$0xff]  }
  0x2a   :  { %609 = vmatprep.subr.bf16.mxu1 %v670_v6  ;;  %v677_v13 = vld [vmem:[#allocation5 + $0x18] sm:$0xff]   ;;  %v681_v17 = vld [vmem:[#allocation5 + $0x20] sm:$0xff]   ;;  %v684_v20 = vld [vmem:[#allocation5 + $0x68] sm:$0xff]  }
  0x2b   :  { %588 = vmatpush3.bf16.msra.mxu0 %v669_v5  ;;  %v678_v14 = vld [vmem:[#allocation5 + $0xd8] sm:$0xff]   ;;  %v682_v18 = vld [vmem:[#allocation5 + $0xe0] sm:$0xff]   ;;  %v685_v21 = vld [vmem:[#allocation5 + $0x28] sm:$0xff]   ;;  %v528_v5 = vstv %s840_s4 }
  0x2c   :  { %589 = vmatprep.subr.bf16.mxu0 %v672_v8  ;;  %v679_v15 = vld [vmem:[#allocation5 + $0x98] sm:$0xff]   ;;  %v683_v19 = vld [vmem:[#allocation5 + $0xa0] sm:$0xff]   ;;  %v686_v22 = vld [vmem:[#allocation5 + $0xe8] sm:$0xff]  }
  0x2d   :  { %610 = vmatpush3.bf16.msra.mxu1 %v671_v7  ;;  %v687_v23 = vld [vmem:[#allocation5 + $0xa8] sm:$0xff]   ;;  %v688_v24 = vld [vmem:[#allocation5 + $0x70] sm:$0xff]   ;;  %v692_v28 = vld [vmem:[#allocation5 + $0x78] sm:$0xff]  }
  0x2e   :  { %611 = vmatprep.subr.bf16.mxu1 %v674_v10  ;;  %v689_v25 = vld [vmem:[#allocation5 + $0x30] sm:$0xff]   ;;  %v693_v29 = vld [vmem:[#allocation5 + $0x38] sm:$0xff]   ;;  %v700_v39 = vld [vmem:[#allocation5 + $0x100] sm:$0xff]  }
  0x2f   :  { %590 = vmatpush3.bf16.msra.mxu0 %v673_v9  ;;  %v690_v26 = vld [vmem:[#allocation5 + $0xf0] sm:$0xff]   ;;  %v694_v30 = vld [vmem:[#allocation5 + $0xf8] sm:$0xff]   ;;  %v701_v40 = vld [vmem:[#allocation5 + $0x108] sm:$0xff]  }
  0x30   :  { %591 = vmatprep.subr.bf16.mxu0 %v676_v12  ;;  %v691_v27 = vld [vmem:[#allocation5 + $0xb0] sm:$0xff]   ;;  %v697_v34 = vld [vmem:[#allocation5 + $0xb8] sm:$0xff]   ;;  %v704_v43 = vld [vmem:[#allocation5 + $0x120] sm:$0xff]  }
  0x31   :  { %612 = vmatpush3.bf16.msra.mxu1 %v675_v11  ;;  %v48_v31 = vld [vmem:[#allocation3] sm:$0xff]  ;;  %v49_v36 = vld [vmem:[#allocation3 + $0x8] sm:$0xff]  ;;  %v708_v47 = vld [vmem:[#allocation3 + $0x10] ss:$0 sps:$4 sm:$0xff]  }
  0x32   :  { %613 = vmatprep.subr.bf16.mxu1 %v678_v14  ;;  %v539_v32 = vcombine.low %v48_v31, %v48_v31  ;;  %v540_v33 = vcombine.high %v48_v31, %v48_v31  ;;  %v541_v37 = vcombine.low %v49_v36, %v49_v36  ;;  %v542_v38 = vcombine.high %v49_v36, %v49_v36  ;;  %v702_v41 = vld [vmem:[#allocation5 + $0x110] sm:$0xff]   ;;  %v703_v42 = vld [vmem:[#allocation5 + $0x118] sm:$0xff]   ;;  %v705_v44 = vld [vmem:[#allocation5 + $0x128] sm:$0xff]  }
  0x33   :  { %592 = vmatpush3.bf16.msra.mxu0 %v677_v13  ;;  %v706_v45 = vld [vmem:[#allocation5 + $0x130] sm:$0xff]   ;;  %v707_v46 = vld [vmem:[#allocation5 + $0x138] sm:$0xff]   ;;  %v538_v49 = vld [vmem:[%s838_s2] ss:$0 sm:$0xff] }
  0x34   :  { %593 = vmatprep.subr.bf16.mxu0 %v680_v16  ;;  %428 = vmatprep.mubr.bf16.mxu0 %v540_v33  ;;  %v584_v1 = vld [vmem:[%s839_s3] ss:$0 sm:$0xff] }
  0x35   :  { %614 = vmatpush3.bf16.msra.mxu1 %v679_v15  ;;  %468 = vmatprep.mubr.bf16.mxu1 %v542_v38 }
  0x36   :  { %615 = vmatprep.subr.bf16.mxu1 %v682_v18 }
  0x37   :  { %594 = vmatpush3.bf16.msra.mxu0 %v681_v17 }
  0x38   :  { %595 = vmatprep.subr.bf16.mxu0 %v684_v20 }
  0x39   :  { %616 = vmatpush3.bf16.msra.mxu1 %v683_v19 }
  0x3a   :  { %617 = vmatprep.subr.bf16.mxu1 %v686_v22 }
  0x3b   :  { %596 = vmatpush3.bf16.msra.mxu0 %v685_v21 }
  0x3c   :  { %597 = vmatprep.subr.bf16.mxu0 %v688_v24 }
  0x3d   :  { %618 = vmatpush3.bf16.msra.mxu1 %v687_v23 }
  0x3e   :  { %619 = vmatprep.subr.bf16.mxu1 %v690_v26 }
  0x3f   :  { %598 = vmatpush3.bf16.msra.mxu0 %v689_v25 }
  0x40   :  { %599 = vmatprep.subr.bf16.mxu0 %v692_v28 }
  0x41   :  { %620 = vmatpush3.bf16.msra.mxu1 %v691_v27 }
  0x42   :  { %621 = vmatprep.subr.bf16.mxu1 %v694_v30 }
  0x43   :  { %600 = vmatpush3.bf16.msra.mxu0 %v693_v29 }
  0x44   :  { %638 = vmatprep.subr.bf16.mxu0 %v761_v35 }
  0x45   :  { %622 = vmatpush3.bf16.msra.mxu1 %v697_v34 }
  0x46   :  { %429 = vmatmul.mubr.bf16.vlgmr.msra.gmra.mrb[0].mxu0 %v539_v32 }
  0x47   :  { %639 = vmatpush3.bf16.msra.mxu0 %v700_v39  ;;  %654 = vmatprep.mubr.msk.bf16.mxu0 %vm762_vm0, %v761_v35 }
  0x48   :  { %469 = vmatmul.mubr.bf16.vlgmr.msra.gmra.mrb[0].mxu1 %v541_v37  ;;  %640 = vmatprep.subr.bf16.mxu0 %v761_v35 }
  0x4b   :  { %641 = vmatpush3.bf16.msra.mxu0 %v701_v40 }
  0x4c   :  { %642 = vmatprep.subr.bf16.mxu0 %v761_v35 }
  0x4f   :  { %643 = vmatpush3.bf16.msra.mxu0 %v702_v41 }
  0x50   :  { %644 = vmatprep.subr.bf16.mxu0 %v761_v35 }
  0x53   :  { %645 = vmatpush3.bf16.msra.mxu0 %v703_v42 }
  0x54   :  { %646 = vmatprep.subr.bf16.mxu0 %v761_v35 }
  0x57   :  { %647 = vmatpush3.bf16.msra.mxu0 %v704_v43 }
  0x58   :  { %648 = vmatprep.subr.bf16.mxu0 %v761_v35 }
  0x5b   :  { %649 = vmatpush3.bf16.msra.mxu0 %v705_v44 }
  0x5c   :  { %650 = vmatprep.subr.bf16.mxu0 %v761_v35 }
  0x5f   :  { %651 = vmatpush3.bf16.msra.mxu0 %v706_v45 }
  0x60   :  { %652 = vmatprep.subr.bf16.mxu0 %v761_v35 }
  0x63   :  { %653 = vmatpush3.bf16.msra.mxu0 %v707_v46 }
  0x66   :  { %655 = vmatmul.mubr.bf16.vlgmr.msra.gmra.mrb[4].mxu0 %v708_v47 }
 0x119   :  { %v601_v48 = vpop.f32.mrb[0].mxu0 }
 0x11a   :  { %v602_v50 = vpop.f32.mrb[1].mxu0 }
 0x11b   :  { %v603_v51 = vadd.f32 %v602_v50, %v601_v48  ;;  %v604_v52 = vpop.f32.mrb[2].mxu0  ;;  %v623_v53 = vpop.f32.mrb[0].mxu1 }
 0x11c   :  { %v605_v54 = vpop.f32.mrb[3].mxu0  ;;  %v624_v55 = vpop.f32.mrb[1].mxu1 }
 0x11d   :  { %v431_v56 = vadd.f32 %v603_v51, %v538_v49  ;;  %v625_v57 = vadd.f32 %v624_v55, %v623_v53  ;;  %v626_v58 = vpop.f32.mrb[2].mxu1 }
 0x11e   :  { %v627_v59 = vpop.f32.mrb[3].mxu1 }
 0x11f   :  { %v471_v60 = vadd.f32 %v625_v57, %v431_v56 }
 0x139   :  { %v510_v61 = vpop.f32.mrb[4].mxu0 }
 0x13a   :  { %v511_v62 = vadd.f32 %v510_v61, %v471_v60  ;;  %v656_v63 = vpop.f32.mrb[5].mxu0 }
 0x13b   :  { %v513_v0 = vpop.f32.mrb[6].mxu0 }
 0x13c   :  { %v516_v2 = vmax.f32 %v511_v62, 0.0  ;;  %v657_v3 = vpop.f32.mrb[7].mxu0 }
 0x13e   :  { %v524_v4 = vmul.f32 %v584_v1, %v516_v2 }
 0x140   :  { %525 = vadd.xlane.f32.xlu0 %v524_v4 }
 0x1cd   :  { %v526_v6 = vpop.xlane.xlu0 %525 }
 0x1ce   :  { %v529_v7 = vadd.f32 %v528_v5, %v526_v6 }
 0x1d0   :  { %531 = vst.msk [vmem:[%s841_s5] sm:$0xff] %vm530_vm1, %v529_v7 }
 0x1d1   :  { %536 = vsyncpa [#allocation4], 1 }
 0x1d2   :  { %537 = vsyncpa [#allocation6], 1 }

</bundles_post_ra>
